<compile_context>
chip_gen: v5e
topology: v5e:2x2
jax: 0.10.0
libtpu: 0.0.40
codegen_flags: <defaults>
</compile_context>

<pallas_src>
import functools

import jax
import jax.numpy as jnp
import numpy as np
from jax import lax
from jax.experimental import pallas as pl
from jax.experimental.pallas import tpu as pltpu


# ----------------------------- in-kernel math helpers ---------------------------

def _elu(x):
    # exp only evaluated on the clamped (<=0) branch -> no inf on the untaken side
    return jnp.where(x > 0, x, jnp.exp(jnp.minimum(x, 0.0)) - 1.0)


def _selu(x):
    alpha = 1.6732632423543772848170429916717
    scale = 1.0507009873554804934193349852946
    return scale * jnp.where(x > 0, x, alpha * (jnp.exp(jnp.minimum(x, 0.0)) - 1.0))


def _atanh(x):
    # manual atanh to guarantee Mosaic lowering
    return 0.5 * (jnp.log(1.0 + x) - jnp.log(1.0 - x))


def _hyp_chain(x, c):
    """logmap(proj(expmap(x, c), c), c) — fused, rsqrt-based (EUP slots)."""
    sqrt_c = abs(c) ** 0.5
    inv_sqrt_c = 1.0 / sqrt_c
    maxnorm = (1.0 - 1e-05) * inv_sqrt_c

    # expmap
    ss = jnp.sum(x * x, axis=-1, keepdims=True)
    inv_n = lax.rsqrt(jnp.maximum(ss, 1e-30))
    n = jnp.maximum(jnp.sqrt(ss), 1e-15)
    if float(c) < 0:
        fac = jnp.tanh(sqrt_c * n) * inv_n * inv_sqrt_c
    else:
        fac = jnp.tan(sqrt_c * n) * inv_n * inv_sqrt_c
    h = fac * x

    # proj
    hs = jnp.sum(h * h, axis=-1, keepdims=True)
    hinv = lax.rsqrt(jnp.maximum(hs, 1e-30))
    hn = jnp.maximum(jnp.sqrt(hs), 1e-15)
    h = jnp.where(hn > maxnorm, h * hinv * maxnorm, h)

    # logmap
    gs = jnp.sum(h * h, axis=-1, keepdims=True)
    ginv = lax.rsqrt(jnp.maximum(gs, 1e-30))
    gn = jnp.maximum(jnp.sqrt(gs), 1e-15)
    if float(c) < 0:
        scale = inv_sqrt_c * _atanh(sqrt_c * gn) * ginv
    else:
        scale = inv_sqrt_c * jnp.arctan(sqrt_c * gn) * ginv
    return scale * h


# ----------------------------- Pallas kernels -----------------------------------

def _feat_map_kernel(x_ref, o_ref, *, c):
    # row-tiled hyperbolic map of the input node features
    o_ref[...] = _hyp_chain(x_ref[...], c)


def _curv_edge_kernel(src_ref, dst_ref, dsti_ref,
                      w1a_ref, w1b_ref, b1_ref, lng_ref, lnb_ref,
                      w2_ref, b2_ref, bns_ref, bnb_ref,
                      wo_ref, bo_ref,
                      out_ref, acc_ref, *, c, tn, te, hid):
    k = pl.program_id(1)            # edge-tile (reduction) axis

    @pl.when(k == 0)
    def _():
        acc_ref[...] = jnp.zeros_like(acc_ref)

    src = src_ref[...]
    dst = dst_ref[...]

    # edge coefficient (f32 on the VPU)
    diff = src - dst
    dist_sq = jnp.sum(diff * diff, axis=-1, keepdims=True)
    dist = jnp.sqrt(dist_sq)
    if float(c) == 0.0:
        coef = 1.0 - jax.nn.sigmoid(dist)
    else:
        multi = jnp.sum(src * dst, axis=-1, keepdims=True)
        coef = 1.0 - jax.nn.sigmoid(
            2.0 * dist - 2.0 * c * (dist * dist_sq / 3.0 + multi * dist_sq))

    # edge_linear.linear1 with split weights: no (TE, 2D) concat materialized,
    # and coef*src + src folded into (coef + 1) * src.  bf16 operands, f32 acc.
    a = ((coef + 1.0) * src).astype(jnp.bfloat16)
    b = dst.astype(jnp.bfloat16)
    h = (jnp.dot(a, w1a_ref[...], preferred_element_type=jnp.float32)
         + jnp.dot(b, w1b_ref[...], preferred_element_type=jnp.float32)
         + b1_ref[...])
    h = _elu(h)

    # LayerNorm: single-pass moments (sum / sum-of-squares) + rsqrt
    inv_h = 1.0 / hid
    s1 = jnp.sum(h, axis=-1, keepdims=True)
    s2 = jnp.sum(h * h, axis=-1, keepdims=True)
    mu = s1 * inv_h
    var = jnp.maximum(s2 * inv_h - mu * mu, 0.0)
    h = (h - mu) * lax.rsqrt(var + 1e-5) * lng_ref[...] + lnb_ref[...]

    # edge_linear.linear2 + ELU
    h = jnp.dot(h.astype(jnp.bfloat16), w2_ref[...],
                preferred_element_type=jnp.float32) + b2_ref[...]
    h = _elu(h)

    # edge_bn (eval mode folded into scale/shift)
    msg = (h * bns_ref[...] + bnb_ref[...]).astype(jnp.bfloat16)     # (TE, H)

    # update_all(copy_e, sum): scatter-add restricted to this dst tile's columns
    n = pl.program_id(0)
    col = n * tn + lax.broadcasted_iota(jnp.int32, (te, tn), 1)
    onehot = (dsti_ref[...] == col).astype(jnp.bfloat16)             # (TE, TN)
    acc_ref[...] += lax.dot_general(
        onehot, msg, (((0,), (0,)), ((), ())),
        preferred_element_type=jnp.float32)                          # (TN, H)

    @pl.when(k == pl.num_programs(1) - 1)
    def _():
        out = jnp.dot(acc_ref[...].astype(jnp.bfloat16), wo_ref[...],
                      preferred_element_type=jnp.float32) + bo_ref[...]
        if float(c) != 0.0:
            out = _selu(_hyp_chain(out, c))
        out_ref[...] = out                   # residual added outside the kernel


# ----------------------------- wrapper -------------------------------------------

def _pick_row_tile(n):
    for t in (1024, 512, 256, 128, 64, 32, 16, 8):
        if n % t == 0:
            return t
    return n


def curv_layer_forward(features, src_idx, dst_idx, params, c, num_dst,
                       *, te=128, tn=None, tr=None):
    c = float(c)
    features = jnp.asarray(features, jnp.float32)
    N, D = features.shape
    H = params["w1"].shape[-1]
    E = int(src_idx.shape[0])

    # 1) hyperbolic map of node features, row-tiled
    if c != 0.0:
        if tr is None:
            tr = _pick_row_tile(N)
        feats = pl.pallas_call(
            functools.partial(_feat_map_kernel, c=c),
            out_shape=jax.ShapeDtypeStruct((N, D), jnp.float32),
            grid_spec=pltpu.PrefetchScalarGridSpec(
                num_scalar_prefetch=0,
                grid=(N // tr,) if N % tr == 0 else (1,),
                in_specs=[pl.BlockSpec((tr, D), lambda i: (i, 0))]
                if N % tr == 0 else [pl.BlockSpec((N, D), lambda i: (0, 0))],
                out_specs=pl.BlockSpec((tr, D), lambda i: (i, 0))
                if N % tr == 0 else pl.BlockSpec((N, D), lambda i: (0, 0)),
            ),
            compiler_params=pltpu.CompilerParams(
                dimension_semantics=("parallel",)),
        )(features)
    else:
        feats = features

    dst_feats = feats[:num_dst]

    # 2) per-edge endpoint gather (JAX glue).
    # TODO(synk): fuse this gather into the kernel (scalar-prefetched indices +
    # manual row DMA from feats kept in pl.ANY) to avoid the extra HBM round trip.
    src_g = feats[src_idx]
    dst_g = dst_feats[dst_idx]
    dst_i = dst_idx.astype(jnp.int32).reshape(E, 1)

    # pad edges to a multiple of te; padded edges get dst id -1 (scatter no-op)
    e_pad = ((E + te - 1) // te) * te
    if e_pad != E:
        pad = e_pad - E
        src_g = jnp.concatenate([src_g, jnp.zeros((pad, D), jnp.float32)], 0)
        dst_g = jnp.concatenate([dst_g, jnp.zeros((pad, D), jnp.float32)], 0)
        dst_i = jnp.concatenate([dst_i, jnp.full((pad, 1), -1, jnp.int32)], 0)

    # pad dst nodes to a multiple of tn (output-stationary dst tiles)
    if tn is None:
        tn = min(256, ((num_dst + 7) // 8) * 8)
    nd_pad = ((num_dst + tn - 1) // tn) * tn

    # bf16 weights for the MXU; W1 pre-split so no concat is needed in-kernel
    w1 = params["w1"]
    w1a = w1[:D].astype(jnp.bfloat16)
    w1b = w1[D:].astype(jnp.bfloat16)
    w2 = params["w2"].astype(jnp.bfloat16)
    wo = params["wo"].astype(jnp.bfloat16)

    kernel = functools.partial(_curv_edge_kernel, c=c, tn=tn, te=te, hid=H)

    # NOTE: grid-invariant parameter blocks could be single-buffered via
    # pipeline_mode=pl.Buffered(1) to reclaim VMEM; left default for portability.
    out = pl.pallas_call(
        kernel,
        out_shape=jax.ShapeDtypeStruct((nd_pad, D), jnp.float32),
        grid_spec=pltpu.PrefetchScalarGridSpec(
            num_scalar_prefetch=0,
            grid=(nd_pad // tn, e_pad // te),
            in_specs=[
                pl.BlockSpec((te, D), lambda n, k: (k, 0)),   # src feats per edge
                pl.BlockSpec((te, D), lambda n, k: (k, 0)),   # dst feats per edge
                pl.BlockSpec((te, 1), lambda n, k: (k, 0)),   # dst id per edge
                pl.BlockSpec((D, H), lambda n, k: (0, 0)),    # W1a (bf16)
                pl.BlockSpec((D, H), lambda n, k: (0, 0)),    # W1b (bf16)
                pl.BlockSpec((1, H), lambda n, k: (0, 0)),    # b1
                pl.BlockSpec((1, H), lambda n, k: (0, 0)),    # LN gamma
                pl.BlockSpec((1, H), lambda n, k: (0, 0)),    # LN beta
                pl.BlockSpec((H, H), lambda n, k: (0, 0)),    # W2 (bf16)
                pl.BlockSpec((1, H), lambda n, k: (0, 0)),    # b2
                pl.BlockSpec((1, H), lambda n, k: (0, 0)),    # BN scale
                pl.BlockSpec((1, H), lambda n, k: (0, 0)),    # BN shift
                pl.BlockSpec((H, D), lambda n, k: (0, 0)),    # W_out (bf16)
                pl.BlockSpec((1, D), lambda n, k: (0, 0)),    # b_out
            ],
            out_specs=pl.BlockSpec((tn, D), lambda n, k: (n, 0)),
            scratch_shapes=[pltpu.VMEM((tn, H), jnp.float32)],
        ),
        compiler_params=pltpu.CompilerParams(
            dimension_semantics=("parallel", "arbitrary"),
            vmem_limit_bytes=64 * 1024 * 1024),
    )(src_g, dst_g, dst_i,
      w1a, w1b, params["b1"], params["ln_g"], params["ln_b"],
      w2, params["b2"], params["bn_scale"], params["bn_shift"],
      wo, params["bo"])

    # residual added in JAX so dst_feats is never resident in kernel VMEM
    return out[:num_dst] + dst_feats


# ----------------------------- parameters & reference ----------------------------

def init_params(key, in_dim, hid_dim, out_dim):
    k1, k2, k3 = jax.random.split(key, 3)

    def xavier(k, fan_in, fan_out):
        std = (2.0 / (fan_in + fan_out)) ** 0.5
        return (std * jax.random.normal(k, (fan_in, fan_out))).astype(jnp.float32)

    bn_eps = 1e-5
    return dict(
        w1=xavier(k1, 2 * in_dim, hid_dim), b1=jnp.zeros((1, hid_dim), jnp.float32),
        ln_g=jnp.ones((1, hid_dim), jnp.float32), ln_b=jnp.zeros((1, hid_dim), jnp.float32),
        w2=xavier(k2, hid_dim, hid_dim), b2=jnp.zeros((1, hid_dim), jnp.float32),
        bn_scale=jnp.full((1, hid_dim), 1.0 / np.sqrt(1.0 + bn_eps), jnp.float32),
        bn_shift=jnp.zeros((1, hid_dim), jnp.float32),
        wo=xavier(k3, hid_dim, out_dim), bo=jnp.zeros((1, out_dim), jnp.float32),
    )


def _ref_hyp_chain(x, c):
    sqrt_c = abs(c) ** 0.5
    n = jnp.maximum(jnp.linalg.norm(x, axis=-1, keepdims=True), 1e-15)
    if float(c) < 0:
        h = jnp.tanh(sqrt_c * n) * x / (sqrt_c * n)
    else:
        h = jnp.tan(sqrt_c * n) * x / (sqrt_c * n)
    hn = jnp.maximum(jnp.linalg.norm(h, axis=-1, keepdims=True), 1e-15)
    maxnorm = (1 - 1e-05) / sqrt_c
    h = jnp.where(hn > maxnorm, h / hn * maxnorm, h)
    gn = jnp.maximum(jnp.linalg.norm(h, axis=-1, keepdims=True), 1e-15)
    if float(c) < 0:
        scale = 1.0 / sqrt_c * jnp.arctanh(sqrt_c * gn) / gn
    else:
        scale = 1.0 / sqrt_c * jnp.arctan(sqrt_c * gn) / gn
    return scale * h


def ref_forward(features, src_idx, dst_idx, p, c, num_dst):
    c = float(c)
    feats = features.astype(jnp.float32)
    if c != 0.0:
        feats = _ref_hyp_chain(feats, c)
    dstf = feats[:num_dst]
    src = feats[src_idx]
    dst = dstf[dst_idx]
    dist = jnp.sqrt(jnp.sum((src - dst) ** 2, -1, keepdims=True))
    if c == 0.0:
        coef = 1.0 - jax.nn.sigmoid(dist)
    else:
        multi = jnp.sum(src * dst, -1, keepdims=True)
        coef = 1.0 - jax.nn.sigmoid(2 * dist - 2 * c * (dist ** 3 / 3 + multi * dist ** 2))
    m = jnp.concatenate([coef * src + src, dst], -1)
    h = m @ p["w1"] + p["b1"]
    h = jnp.where(h > 0, h, jnp.exp(jnp.minimum(h, 0.0)) - 1.0)
    mu = h.mean(-1, keepdims=True)
    var = ((h - mu) ** 2).mean(-1, keepdims=True)
    h = (h - mu) / jnp.sqrt(var + 1e-5) * p["ln_g"] + p["ln_b"]
    h = h @ p["w2"] + p["b2"]
    h = jnp.where(h > 0, h, jnp.exp(jnp.minimum(h, 0.0)) - 1.0)
    msg = h * p["bn_scale"] + p["bn_shift"]
    out = jnp.zeros((num_dst, msg.shape[-1]), jnp.float32).at[dst_idx].add(msg)
    out = out @ p["wo"] + p["bo"]
    if c != 0.0:
        alpha = 1.6732632423543772848170429916717
        scl = 1.0507009873554804934193349852946
        out = _ref_hyp_chain(out, c)
        out = scl * jnp.where(out > 0, out,
                              alpha * (jnp.exp(jnp.minimum(out, 0.0)) - 1.0))
    return out + dstf


# ----------------------------- main -----------------------------------------------

if __name__ == "__main__":
    # lane-dense small test: D = H = 128 (out_dim == in_dim required by residual)
    N, D, H, E = 16, 128, 128, 256
    C = -1.0
    TE, TN, TR = 128, 8, 8        # 2 edge tiles x 2 dst tiles x 2 row tiles

    key = jax.random.PRNGKey(0)
    kf, ks, kd, kp = jax.random.split(key, 4)
    features = jax.random.normal(kf, (N, D), jnp.float32)
    src_idx = jax.random.randint(ks, (E,), 0, N, dtype=jnp.int32)
    dst_idx = jax.random.randint(kd, (E,), 0, N, dtype=jnp.int32)
    params = init_params(kp, D, H, D)

    out = curv_layer_forward(features, src_idx, dst_idx, params, C,
                             num_dst=N, te=TE, tn=TN, tr=TR)
    out = jax.block_until_ready(out)

    ref = ref_forward(features, src_idx, dst_idx, params, C, num_dst=N)
    # bf16 MXU operands with f32 accumulation -> looser tolerance vs f32 reference
    np.testing.assert_allclose(np.asarray(out), np.asarray(ref),
                               rtol=5e-2, atol=5e-2)

    print("KERNEL_OK")
</pallas_src>

<mosaic_0001>
module attributes {stable_mosaic.version = 11 : i64} {
  func.func @_feat_map_kernel(%arg0: i32, %arg1: memref<8x128xf32, #tpu.memory_space<vmem>>, %arg2: memref<8x128xf32, #tpu.memory_space<vmem>>) attributes {dimension_semantics = [#tpu.dimension_semantics<parallel>], iteration_bounds = array<i64: 2>, scalar_prefetch = 0 : i64, scratch_operands = 0 : i64, tpu.core_type = #tpu.core_type<tc>, window_params = [{transform_indices = @transform_0, window_bounds = array<i64: 8, 128>}, {transform_indices = @transform_1, window_bounds = array<i64: 8, 128>}]} {
    %c0 = arith.constant 0 : index
    %c0_0 = arith.constant 0 : index
    %0 = vector.load %arg1[%c0, %c0_0] : memref<8x128xf32, #tpu.memory_space<vmem>>, vector<8x128xf32>
    %1 = arith.mulf %0, %0 : vector<8x128xf32>
    %cst = arith.constant dense<0.000000e+00> : vector<8xf32>
    %2 = vector.multi_reduction <add>, %1, %cst [1] : vector<8x128xf32> to vector<8xf32>
    %3 = vector.shape_cast %2 : vector<8xf32> to vector<8x1xf32>
    %cst_1 = arith.constant 1.000000e-30 : f32
    %4 = vector.broadcast %cst_1 : f32 to vector<8x1xf32>
    %5 = arith.maximumf %3, %4 : vector<8x1xf32>
    %6 = math.rsqrt %5 : vector<8x1xf32>
    %7 = math.sqrt %3 : vector<8x1xf32>
    %cst_2 = arith.constant 1.000000e-15 : f32
    %8 = vector.broadcast %cst_2 : f32 to vector<8x1xf32>
    %9 = arith.maximumf %7, %8 : vector<8x1xf32>
    %cst_3 = arith.constant 1.000000e+00 : f32
    %10 = vector.broadcast %cst_3 : f32 to vector<8x1xf32>
    %11 = arith.mulf %10, %9 : vector<8x1xf32>
    %12 = math.tanh %11 : vector<8x1xf32>
    %13 = arith.mulf %12, %6 : vector<8x1xf32>
    %cst_4 = arith.constant 1.000000e+00 : f32
    %14 = vector.broadcast %cst_4 : f32 to vector<8x1xf32>
    %15 = arith.mulf %13, %14 : vector<8x1xf32>
    %16 = vector.broadcast %15 : vector<8x1xf32> to vector<8x128xf32>
    %17 = arith.mulf %16, %0 : vector<8x128xf32>
    %18 = arith.mulf %17, %17 : vector<8x128xf32>
    %cst_5 = arith.constant dense<0.000000e+00> : vector<8xf32>
    %19 = vector.multi_reduction <add>, %18, %cst_5 [1] : vector<8x128xf32> to vector<8xf32>
    %20 = vector.shape_cast %19 : vector<8xf32> to vector<8x1xf32>
    %cst_6 = arith.constant 1.000000e-30 : f32
    %21 = vector.broadcast %cst_6 : f32 to vector<8x1xf32>
    %22 = arith.maximumf %20, %21 : vector<8x1xf32>
    %23 = math.rsqrt %22 : vector<8x1xf32>
    %24 = math.sqrt %20 : vector<8x1xf32>
    %cst_7 = arith.constant 1.000000e-15 : f32
    %25 = vector.broadcast %cst_7 : f32 to vector<8x1xf32>
    %26 = arith.maximumf %24, %25 : vector<8x1xf32>
    %cst_8 = arith.constant 0.999989986 : f32
    %27 = vector.broadcast %cst_8 : f32 to vector<8x1xf32>
    %28 = arith.cmpf ogt, %26, %27 : vector<8x1xf32>
    %29 = vector.broadcast %23 : vector<8x1xf32> to vector<8x128xf32>
    %30 = arith.mulf %17, %29 : vector<8x128xf32>
    %cst_9 = arith.constant 0.999989986 : f32
    %31 = vector.broadcast %cst_9 : f32 to vector<8x128xf32>
    %32 = arith.mulf %30, %31 : vector<8x128xf32>
    %33 = vector.shape_cast %28 : vector<8x1xi1> to vector<8x1xi1>
    %34 = vector.broadcast %33 : vector<8x1xi1> to vector<8x128xi1>
    %35 = arith.select %34, %32, %17 : vector<8x128xi1>, vector<8x128xf32>
    %36 = arith.mulf %35, %35 : vector<8x128xf32>
    %cst_10 = arith.constant dense<0.000000e+00> : vector<8xf32>
    %37 = vector.multi_reduction <add>, %36, %cst_10 [1] : vector<8x128xf32> to vector<8xf32>
    %38 = vector.shape_cast %37 : vector<8xf32> to vector<8x1xf32>
    %cst_11 = arith.constant 1.000000e-30 : f32
    %39 = vector.broadcast %cst_11 : f32 to vector<8x1xf32>
    %40 = arith.maximumf %38, %39 : vector<8x1xf32>
    %41 = math.rsqrt %40 : vector<8x1xf32>
    %42 = math.sqrt %38 : vector<8x1xf32>
    %cst_12 = arith.constant 1.000000e-15 : f32
    %43 = vector.broadcast %cst_12 : f32 to vector<8x1xf32>
    %44 = arith.maximumf %42, %43 : vector<8x1xf32>
    %cst_13 = arith.constant 1.000000e+00 : f32
    %45 = vector.broadcast %cst_13 : f32 to vector<8x1xf32>
    %46 = arith.mulf %45, %44 : vector<8x1xf32>
    %cst_14 = arith.constant 1.000000e+00 : f32
    %47 = vector.broadcast %cst_14 : f32 to vector<8x1xf32>
    %48 = arith.addf %47, %46 : vector<8x1xf32>
    %49 = math.log %48 : vector<8x1xf32>
    %cst_15 = arith.constant 1.000000e+00 : f32
    %50 = vector.broadcast %cst_15 : f32 to vector<8x1xf32>
    %51 = arith.subf %50, %46 : vector<8x1xf32>
    %52 = math.log %51 : vector<8x1xf32>
    %53 = arith.subf %49, %52 : vector<8x1xf32>
    %cst_16 = arith.constant 5.000000e-01 : f32
    %54 = vector.broadcast %cst_16 : f32 to vector<8x1xf32>
    %55 = arith.mulf %54, %53 : vector<8x1xf32>
    %cst_17 = arith.constant 1.000000e+00 : f32
    %56 = vector.broadcast %cst_17 : f32 to vector<8x1xf32>
    %57 = arith.mulf %56, %55 : vector<8x1xf32>
    %58 = arith.mulf %57, %41 : vector<8x1xf32>
    %59 = vector.broadcast %58 : vector<8x1xf32> to vector<8x128xf32>
    %60 = arith.mulf %59, %35 : vector<8x128xf32>
    %c0_18 = arith.constant 0 : index
    %c0_19 = arith.constant 0 : index
    %61 = vector.load %arg2[%c0_18, %c0_19] : memref<8x128xf32, #tpu.memory_space<vmem>>, vector<8x128xf32>
    tpu.vector_store %arg2[%c0_18, %c0_19], %60 {strides = array<i32>} : memref<8x128xf32, #tpu.memory_space<vmem>>, vector<8x128xf32>,
    return
  }
  func.func @transform_0(%arg0: i32) -> (i32, i32) {
    %c0_i32 = arith.constant 0 : i32
    %c0_i32_0 = arith.constant 0 : i32
    return %arg0, %c0_i32 : i32, i32
  }
  func.func @transform_1(%arg0: i32) -> (i32, i32) {
    %c0_i32 = arith.constant 0 : i32
    %c0_i32_0 = arith.constant 0 : i32
    return %arg0, %c0_i32 : i32, i32
  }
}

</mosaic_0001>

<bundles_post_ra>
// kernel: tpu_custom_call.1
= control target key start
LH: loop header
LB: loop body
LE: loop exit
PB: predicated region body
PF: predicated region fallthrough
CT: control target
= control target key end

     0   :  { %6 = vsyncpa [#allocation3], 0  ;;  %s637_s0 = inlined_call_operand.hbm [shape: f32[16,128], index: 0, kind: input, shape index: {}]   ;;  %s638_s1 = inlined_call_operand.hbm [shape: f32[16,128], index: 1, kind: output, shape index: {}]  }
   0x1   :  { %8 = vsyncpa [#allocation3 + $0x1], 0 }
   0x2   :  { %9 = vsyncpa [#allocation4], 0 }
   0x3   :  { %11 = vsyncpa [#allocation4 + $0x1], 0  ;;  %s506_s6 = smov 0   ;;  %s508_s7 = smov 0  }
   0x4   :  { %s510_s8 = smov 0   ;;  %s512_s9 = smov 0  }
   0x5 LB: > { %s527_s10 = sadd.s32 4294967295, %s494_s9   ;;  %s322_s11 = sadd.s32 4294967294, %s494_s9   ;;  %s494_s9 = sphi %s512_s9, %s648_s9   ;;  %s490_s8 = sphi %s510_s8, %s647_s8   ;;  %s486_s7 = sphi %s508_s7, %s646_s7   ;;  %s482_s6 = sphi %s506_s6, %s645_s6  }
   0x6   : > { %s531_s12 = sadd.s32 1, %s494_s9   ;;  %s24_s13 = sadd.s32 1, %s490_s8 }
   0x7   : > { %s21_s14 = ssub.s32 %s494_s9, %s531_s12  ;;  %p31_p0 = scmp.ne.s32.totalorder %s490_s8, %s486_s7 }
   0x8   : > { %p22_p1 = scmp.eq.s32.totalorder %s21_s14, 0  ;;  %p32_p2 = scmp.eq.s32.totalorder %s494_s9, 0 }
   0x9   : > { %p37_p3 = scmp.ne.s32.totalorder %s486_s7, %s482_s6  ;;  %p38_p4 = scmp.eq.s32.totalorder %s527_s10, 0 }
   0xa   : > { %s543_s15 = scalar_select %p22_p1, %s490_s8, %s24_s13  }
   0xb   : > { %p545_p5 = por %p32_p2, %p31_p0  ;;  %p549_p6 = por %p38_p4, %p37_p3 }
   0xc   : > { %p61_p7 = scmp.eq.s32.totalorder %s527_s10, 1  ;;  %p67_p8 = scmp.eq.s32.totalorder %s322_s11, 1 }
   0xd   : > { %p346_p10 = scmp.lt.s32.totalorder %s494_s9, 2  ;;  %s87_s20 = sand.u32 1, %s490_s8  }
   0xe   : > { %p556_p11 = por %p61_p7, %p31_p0  ;;  %p560_p12 = por %p67_p8, %p37_p3 }
   0xf   : > { %s326_s21 = sshll.u32 %s494_s9, 3  ;;  %s325_s22 = sshll.u32 %s87_s20, 3 }
  0x10   : > { %s95_s25 = scalar_lea.hbm %s637_s0, %s326_s21  ;;  %s91_s27 = scalar_lea.vmem [#allocation2], %s325_s22 }
  0x11   : > { %s97_s26 = sshll.u32 %s95_s25, 4  ;;  %s99_s28 = sshll.u32 %s91_s27, 4  ;;  %s98_s26 = int_to_ptr.hbm [resolvable:$true] %s97_s26  ;;  %s100_s28 = int_to_ptr.vmem [resolvable:$true] %s99_s28 }
  0x12   : > { %p571_p13 = pnand %p346_p10, %p545_p5  ;;  %p327_p0 = scmp.ge.s32.totalorder %s494_s9, 1 }
  0x13   : > { %p104_p1 = scmp.lt.s32.totalorder %s494_s9, 3  ;;  %s88_s30 = scalar_lea.sflag [#allocation3], %s87_s20 }
  0x14   : > { %s398_s2 = sshra.s32 %s98_s26, 4  ;;  %p402_p3 = pneg %p571_p13  ;;  %s399_s2 = int_to_ptr.hbm [resolvable:$true] %s398_s2 }
  0x15   : > { %s400_s3 = scalar_lea.hbm %s399_s2, 8  ;;  %s405_s11 = scalar_lea.hbm %s637_s0, 16 }
  0x16   : > { %p401_p2 = scmp.ne.s32.totalorder %s399_s2, %s400_s3  ;;  %p406_p5 = scmp.lt.s32.totalorder %s399_s2, %s637_s0 }
  0x17   : > { %p407_p8 = scmp.lt.s32.totalorder %s405_s11, %s400_s3 }
  0x18   : > { %p403_p4 = pnand %p402_p3, %p401_p2 }
  0x19   : > { %p408_p10 = por %p407_p8, %p406_p5 }
  0x1a   : > { %p404_p7 = pneg %p403_p4 }
  0x1c   : > { %p409_p9 = pnand %p408_p10, %p404_p7 }
  0x1e   : > { %412 = shalt.err (!%p409_p9)
}
  0x1f   : > { %341 = dma.hbm_to_vmem [thread:$0]  (!%p571_p13), %s98_s26, 128, %s100_s28, %s88_s30  }
  0x20   : > { %p105_p2 = pnand %p327_p0, %p104_p1 }
  0x21   : > { %s592_s16 = sand.u32 (!%p105_p2), 1, %s486_s7  }
  0x22   : > { %108 = sbr.rel (%p105_p2) target bundleno = 500 (0x1f4), region = 24  ;;  %s328_s20 = sshll.u32 (!%p105_p2), %s592_s16, 3 }
  0x23   : > { %s111_s21 = scalar_lea.sflag (!%p105_p2), [#allocation3], %s592_s16  ;;  %s114_s22 = scalar_lea.vmem (!%p105_p2), [#allocation2], %s328_s20 }
  0x27   : > { %473 = dma.done.wait (%p549_p6), %s111_s21, 128  }
  0x28   : > { %475 = vsyncadd (%p549_p6), %s111_s21, 4294967168  ;;  %v134_v0 = vld [vmem:[%s114_s22] sm:$0xff]  ;;  %s331_s17 = sshll.u32 %s527_s10, 3  ;;  %s133_s26 = scalar_lea.vmem [#allocation5], %s328_s20 }
  0x29   : > { %v135_v1 = vmul.f32 %v134_v0, %v134_v0  ;;  %s247_s25 = scalar_lea.hbm %s638_s1, %s331_s17  ;;  %s249_s27 = sshll.u32 %s133_s26, 4  ;;  %s250_s27 = int_to_ptr.vmem [resolvable:$true] %s249_s27 }
  0x2a   : > { %s251_s28 = sshll.u32 %s247_s25, 4  ;;  %s237_s10 = scalar_lea.sflag [#allocation4], %s592_s16  ;;  %s252_s28 = int_to_ptr.hbm [resolvable:$true] %s251_s28 }
  0x2b   : > { %136 = vadd.xlane.f32.xlu0 %v135_v1  ;;  %s442_s29 = sshra.s32 %s252_s28, 4  ;;  %s448_s4 = scalar_lea.hbm %s638_s1, 16  ;;  %s443_s29 = int_to_ptr.hbm [resolvable:$true] %s442_s29 }
  0x2c   : > { %s444_s30 = scalar_lea.hbm %s443_s29, 8  ;;  %p449_p0 = scmp.lt.s32.totalorder %s443_s29, %s638_s1 }
  0x2d   : > { %p445_p6 = scmp.ne.s32.totalorder %s443_s29, %s444_s30  ;;  %p450_p1 = scmp.lt.s32.totalorder %s448_s4, %s444_s30 }
  0x2f   : > { %p446_p9 = pnand %p445_p6, %p556_p11  ;;  %p451_p3 = por %p450_p1, %p449_p0 }
  0x31   : > { %p447_p13 = pneg %p446_p9 }
  0x33   : > { %p452_p4 = pnand %p451_p3, %p447_p13 }
  0x9e   : > { %v137_v2 = vpop.xlane.xlu0 %136 }
  0x9f   : > { %380 = vrsqrt.f32 %v137_v2  ;;  %v138_v3 = vmax.f32 %v137_v2, 1e-30  ;;  %vm156_vm0 = vcmp.eq.f32.partialorder %v137_v2, inf  ;;  %v159_v15 = vand.u32 2147483648, %v137_v2 }
  0xa0   : > { %vm158_vm1 = vcmp.eq.f32.partialorder %v137_v2, 0.0 }
  0xa1   : > { %382 = vrsqrt.f32 %v138_v3  ;;  %vm145_vm3 = vweird.f32 %v138_v3 }
  0xa5   : > { %v381_v4 = vpop.eup %380 }
  0xa6   : > { %v150_v5 = vmul.f32 %v381_v4, %v137_v2 }
  0xa7   : > { %v383_v6 = vpop.eup %382 }
  0xa8   : > { %v151_v7 = vmul.f32 %v381_v4, %v150_v5  ;;  %v140_v8 = vmul.f32 %v383_v6, %v138_v3  ;;  %vm146_vm2 = vweird.f32 %v383_v6 }
  0xa9   : > { %vm147_vm4 = vmor %vm145_vm3, %vm146_vm2 }
  0xaa   : > { %v152_v9 = vmul.f32 0.5, %v151_v7  ;;  %v141_v11 = vmul.f32 %v383_v6, %v140_v8 }
  0xac   : > { %v153_v10 = vsub.f32 1.5, %v152_v9  ;;  %v142_v14 = vmul.f32 0.5, %v141_v11 }
  0xae   : > { %v154_v12 = vmul.f32 %v381_v4, %v153_v10  ;;  %v143_v18 = vsub.f32 1.5, %v142_v14 }
  0xb0   : > { %v155_v13 = vmul.f32 %v154_v12, %v137_v2  ;;  %v144_v20 = vmul.f32 %v383_v6, %v143_v18 }
  0xb2   : > { %v157_v16 = vsel %vm156_vm0, %v137_v2, %v155_v13  ;;  %v148_v22 = vsel %vm147_vm4, %v383_v6, %v144_v20 }
  0xb3   : > { %v160_v17 = vsel %vm158_vm1, %v159_v15, %v157_v16 }
  0xb4   : > { %v161_v19 = vmax.f32 %v160_v17, 1e-15 }
  0xb6   : > { %384 = vtanh.f32 %v161_v19 }
  0xbc   : > { %v385_v21 = vpop.eup %384 }
  0xbd   : > { %v163_v23 = vmul.f32 %v385_v21, %v148_v22 }
  0xbf   : > { %v164_v24 = vmul.f32 %v163_v23, %v134_v0 }
  0xc1   : > { %v165_v25 = vmul.f32 %v164_v24, %v164_v24 }
  0xc3   : > { %166 = vadd.xlane.f32.xlu0 %v165_v25 }
 0x136   : > { %v167_v26 = vpop.xlane.xlu0 %166 }
 0x137   : > { %386 = vrsqrt.f32 %v167_v26  ;;  %v168_v27 = vmax.f32 %v167_v26, 1e-30  ;;  %vm186_vm8 = vcmp.eq.f32.partialorder %v167_v26, inf  ;;  %v189_v41 = vand.u32 2147483648, %v167_v26 }
 0x138   : > { %vm188_vm9 = vcmp.eq.f32.partialorder %v167_v26, 0.0 }
 0x139   : > { %388 = vrsqrt.f32 %v168_v27  ;;  %vm175_vm6 = vweird.f32 %v168_v27 }
 0x13d   : > { %v387_v28 = vpop.eup %386 }
 0x13e   : > { %v180_v29 = vmul.f32 %v387_v28, %v167_v26 }
 0x13f   : > { %v389_v30 = vpop.eup %388 }
 0x140   : > { %v170_v31 = vmul.f32 %v389_v30, %v168_v27  ;;  %v181_v32 = vmul.f32 %v387_v28, %v180_v29  ;;  %vm176_vm5 = vweird.f32 %v389_v30 }
 0x141   : > { %vm177_vm7 = vmor %vm175_vm6, %vm176_vm5 }
 0x142   : > { %v171_v33 = vmul.f32 %v389_v30, %v170_v31  ;;  %v182_v34 = vmul.f32 0.5, %v181_v32 }
 0x144   : > { %v172_v35 = vmul.f32 0.5, %v171_v33  ;;  %v183_v36 = vsub.f32 1.5, %v182_v34 }
 0x146   : > { %v173_v37 = vsub.f32 1.5, %v172_v35  ;;  %v184_v38 = vmul.f32 %v387_v28, %v183_v36 }
 0x148   : > { %v174_v39 = vmul.f32 %v389_v30, %v173_v37  ;;  %v185_v40 = vmul.f32 %v184_v38, %v167_v26 }
 0x14a   : > { %v178_v42 = vsel %vm177_vm7, %v389_v30, %v174_v39  ;;  %v187_v43 = vsel %vm186_vm8, %v167_v26, %v185_v40 }
 0x14b   : > { %v190_v44 = vsel %vm188_vm9, %v189_v41, %v187_v43  ;;  %v193_v45 = vmul.f32 %v178_v42, %v164_v24 }
 0x14c   : > { %v191_v46 = vmax.f32 %v190_v44, 1e-15 }
 0x14d   : > { %v194_v47 = vmul.f32 0.99999, %v193_v45 }
 0x14e   : > { %vm192_vm10 = vcmp.gt.f32.partialorder %v191_v46, 0.99999 }
 0x14f   : > { %v197_v48 = vsel %vm192_vm10, %v194_v47, %v164_v24 }
 0x150   : > { %v198_v49 = vmul.f32 %v197_v48, %v197_v48 }
 0x152   : > { %199 = vadd.xlane.f32.xlu1 %v198_v49 }
 0x1c5   : > { %v200_v50 = vpop.xlane.xlu1 %199 }
 0x1c6   : > { %390 = vrsqrt.f32 %v200_v50  ;;  %v201_v51 = vmax.f32 %v200_v50, 1e-30  ;;  %vm219_vm11 = vcmp.eq.f32.partialorder %v200_v50, inf  ;;  %v222_v61 = vand.u32 2147483648, %v200_v50 }
 0x1c7   : > { %vm221_vm12 = vcmp.eq.f32.partialorder %v200_v50, 0.0 }
 0x1c8   : > { %392 = vrsqrt.f32 %v201_v51  ;;  %vm208_vm14 = vweird.f32 %v201_v51 }
 0x1cc   : > { %v391_v52 = vpop.eup %390 }
 0x1cd   : > { %v213_v53 = vmul.f32 %v391_v52, %v200_v50 }
 0x1ce   : > { %v393_v57 = vpop.eup %392 }
 0x1cf   : > { %v214_v54 = vmul.f32 %v391_v52, %v213_v53  ;;  %v203_v60 = vmul.f32 %v393_v57, %v201_v51  ;;  %vm209_vm13 = vweird.f32 %v393_v57 }
 0x1d0   : > { %vm210_vm15 = vmor %vm208_vm14, %vm209_vm13 }
 0x1d1   : > { %v215_v55 = vmul.f32 0.5, %v214_v54  ;;  %v204_v1 = vmul.f32 %v393_v57, %v203_v60 }
 0x1d3   : > { %v216_v56 = vsub.f32 1.5, %v215_v55  ;;  %v205_v4 = vmul.f32 0.5, %v204_v1 }
 0x1d5   : > { %v217_v58 = vmul.f32 %v391_v52, %v216_v56  ;;  %v206_v5 = vsub.f32 1.5, %v205_v4 }
 0x1d7   : > { %v218_v59 = vmul.f32 %v217_v58, %v200_v50  ;;  %v207_v10 = vmul.f32 %v393_v57, %v206_v5 }
 0x1d9   : > { %v220_v62 = vsel %vm219_vm11, %v200_v50, %v218_v59  ;;  %v211_v13 = vsel %vm210_vm15, %v393_v57, %v207_v10 }
 0x1da   : > { %v223_v63 = vsel %vm221_vm12, %v222_v61, %v220_v62 }
 0x1db   : > { %v224_v0 = vmax.f32 %v223_v63, 1e-15 }
 0x1dd   : > { %v225_v2 = vadd.f32 1.0, %v224_v0  ;;  %v228_v3 = vsub.f32 1.0, %v224_v0 }
 0x1df   : > { %394 = vlog2.f32 %v225_v2 }
 0x1e0   : > { %396 = vlog2.f32 %v228_v3 }
 0x1e5   : > { %v395_v6 = vpop.eup %394 }
 0x1e6   : > { %v397_v7 = vpop.eup %396  ;;  %v227_v8 = vmul.f32 0.6931472, %v395_v6 }
 0x1e7   : > { %v230_v9 = vmul.f32 0.6931472, %v397_v7 }
 0x1e9   : > { %v231_v11 = vsub.f32 %v227_v8, %v230_v9 }
 0x1eb   : > { %v232_v12 = vmul.f32 0.5, %v231_v11 }
 0x1ed   : > { %v233_v14 = vmul.f32 %v232_v12, %v211_v13 }
 0x1ef   : > { %v234_v15 = vmul.f32 %v233_v14, %v197_v48 }
 0x1f1   : > { %235 = vst [vmem:[%s133_s26] sm:$0xff] %v234_v15 }
 0x1f2   : > { %455 = shalt.err (!%p452_p4)
}
 0x1f3   : > { %336 = dma.vmem_to_hbm [thread:$0]  (%p556_p11), %s250_s27, 128, %s252_s28, %s237_s10  }
 0x1f4 PF: > { %s263_s13 = sand.u32 1, %s482_s6   ;;  %p644_p7 = scmp.ge.s32.totalorder %s494_s9, 2 }
 0x1f5   : > { %s264_s14 = scalar_lea.sflag [#allocation4], %s263_s13 }
 0x1f6   : > { %p343_p5 = pnand %p644_p7, %p560_p12 }
 0x1f8   : > { %p344_p8 = pneg %p343_p5 }
 0x1fa   : > { %477 = dma.done.wait (%p344_p8), %s264_s14, 128  }
 0x1fb   : > { %479 = vsyncadd (%p344_p8), %s264_s14, 4294967168  ;;  %p14_p10 = scmp.ge.s32.totalorder %s531_s12, 4   ;;  %s645_s6 = smov %s486_s7 }
 0x1fc   : > { %s646_s7 = smov %s490_s8  ;;  %s647_s8 = smov %s543_s15 }
 0x1fd   : > { %s648_s9 = smov %s531_s12  ;;  %16 = sbr.rel (!%p14_p10) target bundleno = 5 (0x5), region = 69 }
 0x202   :  { %270 = vsyncpa [#allocation3], 1 }
 0x203   :  { %272 = vsyncpa [#allocation3 + $0x1], 1 }
 0x204   :  { %273 = vsyncpa [#allocation4], 1 }
 0x205   :  { %275 = vsyncpa [#allocation4 + $0x1], 1 }

</bundles_post_ra>
